<compile_context>
chip_gen: v7x
topology: tpu7x:2x2x1
jax: 0.10.0
libtpu: 0.0.40
codegen_flags: <defaults>
</compile_context>

<pallas_src>
import functools

import jax
import jax.numpy as jnp
from jax.experimental import pallas as pl
from jax.experimental.pallas import tpu as pltpu


def _stable_sigmoid(x):
    # numerically stable sigmoid: never exponentiates a positive argument.
    pos = 1.0 / (1.0 + jnp.exp(-jnp.abs(x)))
    return jnp.where(x >= 0.0, pos, 1.0 - pos)


def _detector_kernel(inv_t, x_ref, encw_ref, encb_ref, clsw_ref, clsb_ref,
                     detect_ref, msg_ref, msg_acc):
    # x_ref      : (1, T_TILE)     one time tile of one batch element
    # encw_ref   : (D, 1)          synthetic encoder 1x1-conv weight
    # encb_ref   : (D, 1)          encoder bias
    # clsw_ref   : (O, D)          classifier 1x1-conv weight, O = 2 + nbits
    # clsb_ref   : (O, 1)          classifier bias
    # detect_ref : (2, T_TILE)     softmax over the 2 detection channels
    # msg_ref    : (nbits, 1)      sigmoid(mean over time), written once per batch
    # msg_acc    : (nbits, 1) f32  running time-sum scratch (persists across tiles)
    t = pl.program_id(1)

    @pl.when(t == 0)
    def _():
        msg_acc[...] = jnp.zeros_like(msg_acc)

    x = x_ref[...]                                                    # (1, T_TILE)

    # ---- encoder stub: 1x1 conv + ReLU (elementwise broadcast on VPU) ----
    feat = jnp.maximum(encw_ref[...] * x + encb_ref[...], 0.0)        # (D, T_TILE)

    # ---- classifier: Conv1d(D, 2+nbits, kernel_size=1) == matmul on MXU ----
    out = jnp.dot(clsw_ref[...], feat,
                  preferred_element_type=jnp.float32) + clsb_ref[...]  # (O, T_TILE)

    # ---- detection head: 2-way softmax == sigmoid of the logit difference ----
    diff = out[1:2, :] - out[0:1, :]                                  # (1, T_TILE)
    p1 = _stable_sigmoid(diff)
    p0 = 1.0 - p1
    detect_ref[...] = jnp.concatenate([p0, p1], axis=0)               # (2, T_TILE)

    # ---- message head: accumulate per-channel time sums in f32 scratch ----
    msg_acc[...] += jnp.sum(out[2:, :], axis=-1, keepdims=True)       # (nbits, 1)

    @pl.when(t == pl.num_programs(1) - 1)
    def _():
        msg_ref[...] = _stable_sigmoid(msg_acc[...] * inv_t)


def audioseal_detector_forward(x, enc_w, enc_b, cls_w, cls_b, nbits, t_tile=1024):
    """x: (B, 1, T) float32 audio; returns (detect_scores (B,2,T), msg_scores (B,nbits))."""
    B, _, T = x.shape
    D = enc_w.shape[0]
    O = cls_w.shape[0]
    assert O == 2 + nbits
    t_tile = min(t_tile, T)
    assert t_tile % 128 == 0, "time tile must be a multiple of 128 lanes"
    # TODO(synk): ragged T (T % t_tile != 0) would need lane masking in the msg sum.
    assert T % t_tile == 0, "T must be divisible by t_tile"
    n_t = T // t_tile

    kernel = functools.partial(_detector_kernel, float(1.0 / T))

    detect, msg3 = pl.pallas_call(
        kernel,
        out_shape=(
            jax.ShapeDtypeStruct((B, 2, T), jnp.float32),
            jax.ShapeDtypeStruct((B, nbits, 1), jnp.float32),
        ),
        grid_spec=pltpu.PrefetchScalarGridSpec(
            num_scalar_prefetch=0,
            grid=(B, n_t),
            in_specs=[
                # x: one (1, t_tile) slab per step, batch dim squeezed away
                pl.BlockSpec((pl.Squeezed(), 1, t_tile), lambda b, t: (b, 0, t)),
                pl.BlockSpec((D, 1), lambda b, t: (0, 0)),     # enc_w
                pl.BlockSpec((D, 1), lambda b, t: (0, 0)),     # enc_b
                pl.BlockSpec((O, D), lambda b, t: (0, 0)),     # cls_w
                pl.BlockSpec((O, 1), lambda b, t: (0, 0)),     # cls_b
            ],
            out_specs=[
                pl.BlockSpec((pl.Squeezed(), 2, t_tile), lambda b, t: (b, 0, t)),
                # msg block is resident across the time axis; written only at t==last
                pl.BlockSpec((pl.Squeezed(), nbits, 1), lambda b, t: (b, 0, 0)),
            ],
            scratch_shapes=[pltpu.VMEM((nbits, 1), jnp.float32)],
        ),
        compiler_params=pltpu.CompilerParams(
            dimension_semantics=("parallel", "arbitrary")),
    )(x, enc_w, enc_b, cls_w, cls_b)

    return detect, msg3[:, :, 0]


def _reference_forward(x, enc_w, enc_b, cls_w, cls_b):
    # pure-JAX reference with identical semantics (for sanity check)
    feat = jnp.maximum(enc_w[None, :, :] * x + enc_b[None, :, :], 0.0)      # (B, D, T)
    out = jnp.einsum("od,bdt->bot", cls_w, feat) + cls_b[None, :, :]        # (B, O, T)
    detect = jax.nn.softmax(out[:, :2, :], axis=1)
    msg = jax.nn.sigmoid(out[:, 2:, :].mean(axis=-1))
    return detect, msg


if __name__ == "__main__":
    key = jax.random.PRNGKey(0)
    k1, k2, k3, k4, k5 = jax.random.split(key, 5)

    B, T = 2, 4096         # batch, audio length (multiple of the 1024-lane tile)
    D = 32                 # encoder.output_dim
    nbits = 8
    O = 2 + nbits
    T_TILE = 1024          # 512-4096 lane range per perf guidance; 4 time tiles here

    x = jax.random.normal(k1, (B, 1, T), dtype=jnp.float32)

    # deterministic synthetic parameters
    enc_w = jax.random.normal(k2, (D, 1), dtype=jnp.float32) * 0.5   # Conv1d(1, D, 1) weight
    enc_b = jax.random.normal(k3, (D, 1), dtype=jnp.float32) * 0.1
    cls_w = jax.random.normal(k4, (O, D), dtype=jnp.float32) * 0.2   # Conv1d(D, 2+nbits, 1) weight
    cls_b = jax.random.normal(k5, (O, 1), dtype=jnp.float32) * 0.1

    detect_scores, msg_scores = audioseal_detector_forward(
        x, enc_w, enc_b, cls_w, cls_b, nbits, t_tile=T_TILE)
    jax.block_until_ready((detect_scores, msg_scores))

    ref_detect, ref_msg = _reference_forward(x, enc_w, enc_b, cls_w, cls_b)
    assert detect_scores.shape == (B, 2, T)
    assert msg_scores.shape == (B, nbits)
    assert jnp.allclose(detect_scores, ref_detect, atol=1e-4, rtol=1e-4)
    assert jnp.allclose(msg_scores, ref_msg, atol=1e-4, rtol=1e-4)

    print("KERNEL_OK")
</pallas_src>

<mosaic_0001>
module attributes {stable_mosaic.version = 11 : i64} {
  func.func @_detector_kernel(%arg0: i32, %arg1: i32, %arg2: memref<1x1x1024xf32, #tpu.memory_space<vmem>>, %arg3: memref<32x1xf32, #tpu.memory_space<vmem>>, %arg4: memref<32x1xf32, #tpu.memory_space<vmem>>, %arg5: memref<10x32xf32, #tpu.memory_space<vmem>>, %arg6: memref<10x1xf32, #tpu.memory_space<vmem>>, %arg7: memref<1x2x1024xf32, #tpu.memory_space<vmem>>, %arg8: memref<1x8x1xf32, #tpu.memory_space<vmem>>, %arg9: memref<8x1xf32, #tpu.memory_space<vmem>>) attributes {dimension_semantics = [#tpu.dimension_semantics<parallel>, #tpu.dimension_semantics<arbitrary>], iteration_bounds = array<i64: 2, 4>, scalar_prefetch = 0 : i64, scratch_operands = 1 : i64, tpu.core_type = #tpu.core_type<tc>, window_params = [{transform_indices = @transform_0, window_bounds = array<i64: 1, 1, 1024>}, {pipeline_mode = #tpu.pipeline_mode<synchronous>, transform_indices = @transform_1, window_bounds = array<i64: 32, 1>}, {pipeline_mode = #tpu.pipeline_mode<synchronous>, transform_indices = @transform_2, window_bounds = array<i64: 32, 1>}, {pipeline_mode = #tpu.pipeline_mode<synchronous>, transform_indices = @transform_3, window_bounds = array<i64: 10, 32>}, {pipeline_mode = #tpu.pipeline_mode<synchronous>, transform_indices = @transform_4, window_bounds = array<i64: 10, 1>}, {transform_indices = @transform_5, window_bounds = array<i64: 1, 2, 1024>}, {transform_indices = @transform_6, window_bounds = array<i64: 1, 8, 1>}]} {
    %c0_i32 = arith.constant 0 : i32
    %0 = arith.cmpi eq, %arg1, %c0_i32 : i32
    %1 = arith.extui %0 : i1 to i32
    %c0_i32_0 = arith.constant 0 : i32
    %2 = arith.cmpi ne, %1, %c0_i32_0 : i32
    scf.if %2 {
      %cst_27 = arith.constant 0.000000e+00 : f32
      %50 = vector.broadcast %cst_27 : f32 to vector<8x1xf32>
      %c0_28 = arith.constant 0 : index
      %c0_29 = arith.constant 0 : index
      %51 = vector.load %arg9[%c0_28, %c0_29] : memref<8x1xf32, #tpu.memory_space<vmem>>, vector<8x1xf32>
      tpu.vector_store %arg9[%c0_28, %c0_29], %50 {strides = array<i32>} : memref<8x1xf32, #tpu.memory_space<vmem>>, vector<8x1xf32>,
    } else {
    }
    %c0 = arith.constant 0 : index
    %c0_1 = arith.constant 0 : index
    %c0_2 = arith.constant 0 : index
    %3 = vector.load %arg2[%c0, %c0_1, %c0_2] : memref<1x1x1024xf32, #tpu.memory_space<vmem>>, vector<1x1x1024xf32>
    %4 = vector.shape_cast %3 : vector<1x1x1024xf32> to vector<1x1024xf32>
    %c0_3 = arith.constant 0 : index
    %c0_4 = arith.constant 0 : index
    %5 = vector.load %arg3[%c0_3, %c0_4] : memref<32x1xf32, #tpu.memory_space<vmem>>, vector<32x1xf32>
    %6 = vector.broadcast %5 : vector<32x1xf32> to vector<32x1024xf32>
    %7 = vector.broadcast %4 : vector<1x1024xf32> to vector<32x1024xf32>
    %8 = arith.mulf %6, %7 : vector<32x1024xf32>
    %c0_5 = arith.constant 0 : index
    %c0_6 = arith.constant 0 : index
    %9 = vector.load %arg4[%c0_5, %c0_6] : memref<32x1xf32, #tpu.memory_space<vmem>>, vector<32x1xf32>
    %10 = vector.broadcast %9 : vector<32x1xf32> to vector<32x1024xf32>
    %11 = arith.addf %8, %10 : vector<32x1024xf32>
    %cst = arith.constant 0.000000e+00 : f32
    %12 = vector.broadcast %cst : f32 to vector<32x1024xf32>
    %13 = arith.maximumf %11, %12 : vector<32x1024xf32>
    %c0_7 = arith.constant 0 : index
    %c0_8 = arith.constant 0 : index
    %14 = vector.load %arg5[%c0_7, %c0_8] : memref<10x32xf32, #tpu.memory_space<vmem>>, vector<10x32xf32>
    %cst_9 = arith.constant dense<0.000000e+00> : vector<10x1024xf32>
    %15 = tpu.matmul %14, %13, %cst_9 {dimension_numbers = #tpu.dot_dimension_numbers<[1], [0], [0], [1], [0, 0, 1, 1], [], []>} : vector<10x32xf32>, vector<32x1024xf32>, vector<10x1024xf32> -> vector<10x1024xf32>
    %c0_10 = arith.constant 0 : index
    %c0_11 = arith.constant 0 : index
    %16 = vector.load %arg6[%c0_10, %c0_11] : memref<10x1xf32, #tpu.memory_space<vmem>>, vector<10x1xf32>
    %17 = vector.broadcast %16 : vector<10x1xf32> to vector<10x1024xf32>
    %18 = arith.addf %15, %17 : vector<10x1024xf32>
    %19 = vector.extract_strided_slice %18 {offsets = [1, 0], sizes = [1, 1024], strides = [1, 1]} : vector<10x1024xf32> to vector<1x1024xf32>
    %20 = vector.extract_strided_slice %18 {offsets = [0, 0], sizes = [1, 1024], strides = [1, 1]} : vector<10x1024xf32> to vector<1x1024xf32>
    %21 = arith.subf %19, %20 : vector<1x1024xf32>
    %22 = math.absf %21 : vector<1x1024xf32>
    %cst_12 = arith.constant 0.000000e+00 : f32
    %23 = vector.broadcast %cst_12 : f32 to vector<1x1024xf32>
    %24 = arith.subf %23, %22 : vector<1x1024xf32>
    %25 = math.exp %24 : vector<1x1024xf32>
    %cst_13 = arith.constant 1.000000e+00 : f32
    %26 = vector.broadcast %cst_13 : f32 to vector<1x1024xf32>
    %27 = arith.addf %26, %25 : vector<1x1024xf32>
    %cst_14 = arith.constant 1.000000e+00 : f32
    %28 = vector.broadcast %cst_14 : f32 to vector<1x1024xf32>
    %29 = arith.divf %28, %27 : vector<1x1024xf32>
    %cst_15 = arith.constant 0.000000e+00 : f32
    %30 = vector.broadcast %cst_15 : f32 to vector<1x1024xf32>
    %31 = arith.cmpf oge, %21, %30 : vector<1x1024xf32>
    %cst_16 = arith.constant 1.000000e+00 : f32
    %32 = vector.broadcast %cst_16 : f32 to vector<1x1024xf32>
    %33 = arith.subf %32, %29 : vector<1x1024xf32>
    %34 = arith.select %31, %29, %33 : vector<1x1024xi1>, vector<1x1024xf32>
    %cst_17 = arith.constant 1.000000e+00 : f32
    %35 = vector.broadcast %cst_17 : f32 to vector<1x1024xf32>
    %36 = arith.subf %35, %34 : vector<1x1024xf32>
    %37 = tpu.concatenate %36, %34 in 0 : vector<1x1024xf32>, vector<1x1024xf32> -> vector<2x1024xf32>
    %c0_18 = arith.constant 0 : index
    %c0_19 = arith.constant 0 : index
    %c0_20 = arith.constant 0 : index
    %38 = vector.load %arg7[%c0_18, %c0_19, %c0_20] : memref<1x2x1024xf32, #tpu.memory_space<vmem>>, vector<1x2x1024xf32>
    %39 = vector.shape_cast %38 : vector<1x2x1024xf32> to vector<2x1024xf32>
    %40 = vector.shape_cast %37 : vector<2x1024xf32> to vector<1x2x1024xf32>
    tpu.vector_store %arg7[%c0_18, %c0_19, %c0_20], %40 {strides = array<i32>} : memref<1x2x1024xf32, #tpu.memory_space<vmem>>, vector<1x2x1024xf32>,
    %c0_21 = arith.constant 0 : index
    %c0_22 = arith.constant 0 : index
    %41 = vector.load %arg9[%c0_21, %c0_22] : memref<8x1xf32, #tpu.memory_space<vmem>>, vector<8x1xf32>
    %42 = vector.extract_strided_slice %18 {offsets = [2, 0], sizes = [8, 1024], strides = [1, 1]} : vector<10x1024xf32> to vector<8x1024xf32>
    %cst_23 = arith.constant dense<0.000000e+00> : vector<8xf32>
    %43 = vector.multi_reduction <add>, %42, %cst_23 [1] : vector<8x1024xf32> to vector<8xf32>
    %44 = vector.shape_cast %43 : vector<8xf32> to vector<8x1xf32>
    %45 = arith.addf %41, %44 : vector<8x1xf32>
    %c0_24 = arith.constant 0 : index
    %c0_25 = arith.constant 0 : index
    %46 = vector.load %arg9[%c0_24, %c0_25] : memref<8x1xf32, #tpu.memory_space<vmem>>, vector<8x1xf32>
    tpu.vector_store %arg9[%c0_24, %c0_25], %45 {strides = array<i32>} : memref<8x1xf32, #tpu.memory_space<vmem>>, vector<8x1xf32>,
    %c3_i32 = arith.constant 3 : i32
    %47 = arith.cmpi eq, %arg1, %c3_i32 : i32
    %48 = arith.extui %47 : i1 to i32
    %c0_i32_26 = arith.constant 0 : i32
    %49 = arith.cmpi ne, %48, %c0_i32_26 : i32
    scf.if %49 {
      %c0_27 = arith.constant 0 : index
      %c0_28 = arith.constant 0 : index
      %50 = vector.load %arg9[%c0_27, %c0_28] : memref<8x1xf32, #tpu.memory_space<vmem>>, vector<8x1xf32>
      %cst_29 = arith.constant 2.44140625E-4 : f32
      %51 = vector.broadcast %cst_29 : f32 to vector<8x1xf32>
      %52 = arith.mulf %50, %51 : vector<8x1xf32>
      %53 = math.absf %52 : vector<8x1xf32>
      %cst_30 = arith.constant 0.000000e+00 : f32
      %54 = vector.broadcast %cst_30 : f32 to vector<8x1xf32>
      %55 = arith.subf %54, %53 : vector<8x1xf32>
      %56 = math.exp %55 : vector<8x1xf32>
      %cst_31 = arith.constant 1.000000e+00 : f32
      %57 = vector.broadcast %cst_31 : f32 to vector<8x1xf32>
      %58 = arith.addf %57, %56 : vector<8x1xf32>
      %cst_32 = arith.constant 1.000000e+00 : f32
      %59 = vector.broadcast %cst_32 : f32 to vector<8x1xf32>
      %60 = arith.divf %59, %58 : vector<8x1xf32>
      %cst_33 = arith.constant 0.000000e+00 : f32
      %61 = vector.broadcast %cst_33 : f32 to vector<8x1xf32>
      %62 = arith.cmpf oge, %52, %61 : vector<8x1xf32>
      %cst_34 = arith.constant 1.000000e+00 : f32
      %63 = vector.broadcast %cst_34 : f32 to vector<8x1xf32>
      %64 = arith.subf %63, %60 : vector<8x1xf32>
      %65 = arith.select %62, %60, %64 : vector<8x1xi1>, vector<8x1xf32>
      %c0_35 = arith.constant 0 : index
      %c0_36 = arith.constant 0 : index
      %c0_37 = arith.constant 0 : index
      %66 = vector.load %arg8[%c0_35, %c0_36, %c0_37] : memref<1x8x1xf32, #tpu.memory_space<vmem>>, vector<1x8x1xf32>
      %67 = vector.shape_cast %66 : vector<1x8x1xf32> to vector<8x1xf32>
      %68 = vector.shape_cast %65 : vector<8x1xf32> to vector<1x8x1xf32>
      tpu.vector_store %arg8[%c0_35, %c0_36, %c0_37], %68 {strides = array<i32>} : memref<1x8x1xf32, #tpu.memory_space<vmem>>, vector<1x8x1xf32>,
    } else {
    }
    return
  }
  func.func @transform_0(%arg0: i32, %arg1: i32) -> (i32, i32, i32) {
    %c0_i32 = arith.constant 0 : i32
    %c0_i32_0 = arith.constant 0 : i32
    return %arg0, %c0_i32, %arg1 : i32, i32, i32
  }
  func.func @transform_1(%arg0: i32, %arg1: i32) -> (i32, i32) {
    %c0_i32 = arith.constant 0 : i32
    %c0_i32_0 = arith.constant 0 : i32
    %c0_i32_1 = arith.constant 0 : i32
    return %c0_i32, %c0_i32_0 : i32, i32
  }
  func.func @transform_2(%arg0: i32, %arg1: i32) -> (i32, i32) {
    %c0_i32 = arith.constant 0 : i32
    %c0_i32_0 = arith.constant 0 : i32
    %c0_i32_1 = arith.constant 0 : i32
    return %c0_i32, %c0_i32_0 : i32, i32
  }
  func.func @transform_3(%arg0: i32, %arg1: i32) -> (i32, i32) {
    %c0_i32 = arith.constant 0 : i32
    %c0_i32_0 = arith.constant 0 : i32
    %c0_i32_1 = arith.constant 0 : i32
    return %c0_i32, %c0_i32_0 : i32, i32
  }
  func.func @transform_4(%arg0: i32, %arg1: i32) -> (i32, i32) {
    %c0_i32 = arith.constant 0 : i32
    %c0_i32_0 = arith.constant 0 : i32
    %c0_i32_1 = arith.constant 0 : i32
    return %c0_i32, %c0_i32_0 : i32, i32
  }
  func.func @transform_5(%arg0: i32, %arg1: i32) -> (i32, i32, i32) {
    %c0_i32 = arith.constant 0 : i32
    %c0_i32_0 = arith.constant 0 : i32
    return %arg0, %c0_i32, %arg1 : i32, i32, i32
  }
  func.func @transform_6(%arg0: i32, %arg1: i32) -> (i32, i32, i32) {
    %c0_i32 = arith.constant 0 : i32
    %c0_i32_0 = arith.constant 0 : i32
    %c0_i32_1 = arith.constant 0 : i32
    return %arg0, %c0_i32, %c0_i32_0 : i32, i32, i32
  }
}

</mosaic_0001>

<bundles_post_ra>
// kernel: tpu_custom_call.1
= control target key start
LH: loop header
LB: loop body
LE: loop exit
PB: predicated region body
PF: predicated region fallthrough
CT: control target
= control target key end

     0   :  { %12 = vsyncpa [#allocation4], 0  ;;  %s1898_s0 = inlined_call_operand.vmem [shape: f32[2,1,4096], index: 0, kind: input, shape index: {}]   ;;  %s1899_s1 = inlined_call_operand.vmem [shape: f32[32,1], index: 1, kind: input, shape index: {}]   ;;  %s1900_s2 = inlined_call_operand.vmem [shape: f32[32,1], index: 2, kind: input, shape index: {}]   ;;  %s1901_s3 = inlined_call_operand.vmem [shape: f32[10,32], index: 3, kind: input, shape index: {}]   ;;  %s1902_s4 = inlined_call_operand.vmem [shape: f32[10,1], index: 4, kind: input, shape index: {}]   ;;  %s1903_s5 = inlined_call_operand.hbm [shape: f32[2,2,4096], index: 5, kind: output, shape index: {0}]   ;;  %s1904_s6 = inlined_call_operand.vmem [shape: f32[2,8,1], index: 6, kind: output, shape index: {1}]  }
   0x1   :  { %14 = vsyncpa [#allocation4 + $0x1], 0  ;;  %s1503_s21 = smov 0   ;;  %s1505_s22 = smov 0  }
   0x2   :  { %s1507_s23 = smov 0   ;;  %s1509_s24 = smov 0  }
   0x3   :  { %s1511_s25 = smov 0   ;;  %s1513_s26 = smov 0  }
   0x4   :  { %s1515_s27 = smov 0   ;;  %s1517_s28 = smov 0  }
   0x5 LB: > { %1910 = sst [smem:[#allocation6_spill]] %s1453_s26  ;;  %s1197_s29 = sadd.s32 4294967295, %s1461_s28   ;;  %s1461_s28 = sphi %s1517_s28, %s20_s28   ;;  %s1457_s27 = sphi %s1515_s27, %s1920_s27   ;;  %s1453_s26 = sphi %s1513_s26, %s1919_s26   ;;  %s1449_s25 = sphi %s1511_s25, %s1918_s25   ;;  %s1445_s24 = sphi %s1509_s24, %s1917_s24   ;;  %s1441_s23 = sphi %s1507_s23, %s1923_s23   ;;  %s1437_s22 = sphi %s1505_s22, %s1922_s22   ;;  %s1433_s21 = sphi %s1503_s21, %s1921_s21  }
   0x6   : > { %1911 = sst [smem:[#allocation7_spill]] %s1457_s27  ;;  %s1198_s30 = sadd.s32 4294967294, %s1461_s28  }
   0x7   : > { %s29_s7 = sadd.s32 1, %s1453_s26  ;;  %s32_s8 = sadd.s32 1, %s1457_s27 }
   0x8   : > { %p30_p0 = scmp.ge.s32.totalorder %s29_s7, 4  ;;  %p163_p1 = scmp.ne.s32.totalorder %s1441_s23, %s1437_s22 }
   0x9   : > { %p164_p2 = scmp.eq.s32.totalorder %s1197_s29, 7  ;;  %p169_p5 = scmp.ne.s32.totalorder %s1437_s22, %s1433_s21 }
   0xa   : > { %s1925_s7 = smov (%p30_p0, %s29_s7), 0  ;;  %s1927_s8 = smov (!%p30_p0, %s32_s8), %s1457_s27 }
   0xb   : > { %1912 = sst [smem:[#allocation8_spill]] %s1925_s7  ;;  %s149_s9 = ssub.s32 %s1453_s26, %s1925_s7 }
   0xc   : > { %p1554_p3 = por %p164_p2, %p163_p1  ;;  %p34_p4 = scmp.ge.s32.totalorder %s1927_s8, 2 }
   0xd   : > { %p170_p6 = scmp.eq.s32.totalorder %s1198_s30, 7  ;;  %p1201_p7 = scmp.ge.s32.totalorder %s1461_s28, 1 }
   0xe   : > { %s1929_s8 = smov (%p34_p4, %s1927_s8), 0  ;;  %p238_p9 = scmp.lt.s32.totalorder %s1461_s28, 9 }
   0xf   : > { %1914 = sst [smem:[#allocation9_spill]] %s1929_s8  ;;  %p1563_p8 = por %p170_p6, %p169_p5 }
  0x10   : > { %s148_s12 = ssub.s32 %s1457_s27, %s1929_s8  ;;  %s153_s13 = sadd.s32 1, %s1441_s23 }
  0x11   : > { %s150_s14 = sor.u32 %s149_s9, %s148_s12  ;;  %p239_p10 = pnand %p1201_p7, %p238_p9 }
  0x12   : > { %p151_p11 = scmp.eq.s32.totalorder %s150_s14, 0  ;;  %s1909_s16 = sand.u32 (!%p239_p10), 1, %s1437_s22  }
  0x13   : > { %242 = sbr.rel (%p239_p10) target bundleno = 646 (0x286), region = 40  ;;  %s1576_s17 = sshll.u32 (!%p239_p10), %s1445_s24, 3 }
  0x14   : > { %s1572_s15 = scalar_select %p151_p11, %s1441_s23, %s153_s13  }
  0x15   : > { %s1202_s18 = sshll.u32 (!%p239_p10), %s1909_s16, 4  ;;  %p276_p12 = scmp.lt.s32.totalorder (!%p239_p10), %s1449_s25, 1 }
  0x16   : > { %p278_p13 = scmp.lt.s32.totalorder (!%p239_p10), %s1576_s17, 31  ;;  %s1595_s26 = scalar_lea.vmem (!%p239_p10), [#allocation3], %s1202_s18 }
  0x17   : > { %p1206_p0 = scmp.ne.s32.totalorder (!%p239_p10), %s1445_s24, 0 }
  0x1a   : > { %s277_s19 = scalar_select %p276_p12, %s1449_s25, 1 }
  0x1b   : > { %s279_s20 = scalar_select %p278_p13, %s1576_s17, 31 }
  0x1c   : > { %s1204_s29 = sshll.u32 %s277_s19, 5  ;;  %s1205_s30 = sshll.u32 %s277_s19, 3  ;;  %vm293_vm0 = vcmask (!%p1206_p0), 7168   ;;  %v1463_v0 = vmov (!%p1206_p0), 0.0  }
  0x1d   : > { %s1584_s9 = sadd.s32 %s1204_s29, %s279_s20  ;;  %s1589_s14 = scalar_lea.vmem %s1904_s6, %s1205_s30  ;;  %294 = vst.msk [vmem:[#allocation2] sm:$0xff] (!%p1206_p0), %vm293_vm0, %v1463_v0 }
  0x1e   : > { %s282_s27 = scalar_lea.vmem %s1898_s0, %s1584_s9  ;;  %292 = sbr.rel (%p1206_p0) target bundleno = 37 (0x25), region = 44 }
  0x25 PF: > { %v393_v1 = vld [vmem:[%s1900_s2] sm:$0xff]  ;;  %v1464_v3 = vmov 0   ;;  %v394_v4 = vld [vmem:[%s1900_s2 + $0x8] sm:$0xff]  ;;  %v299_v6 = vld [vmem:[%s1899_s1 + $0x18] sm:$0xff]  ;;  %v1465_v12 = vmov 0.0   ;;  %v321_v13 = vlaneseq  ;;  %vm495_vm1 = vcmask 261120  }
  0x26   : > { %v296_v2 = vld [vmem:[%s1899_s1] sm:$0xff]  ;;  %1330 = vset.pattern.permute.xlu1 %v1464_v3  ;;  %1329 = vset.pattern.permute.xlu0 %v1464_v3  ;;  %v297_v5 = vld [vmem:[%s1899_s1 + $0x8] sm:$0xff]  ;;  %v298_v7 = vld [vmem:[%s1899_s1 + $0x10] sm:$0xff]  ;;  %vm1010_vm2 = vcmask 1047554   ;;  %vm1028_vm3 = vcmask 1041408   ;;  %vm954_vm5 = vcmask 1040384  }
  0x27   : > { %399 = vperm.xlu1 %1330, %v393_v1   ;;  %302 = vperm.xlu0 %1329, %v296_v2   ;;  %v396_v8 = vld [vmem:[%s1900_s2 + $0x18] sm:$0xff]  ;;  %v395_v9 = vld [vmem:[%s1900_s2 + $0x10] sm:$0xff]  ;;  %v484_v10 = vld [vmem:[%s1902_s4 + $0x8] sm:$0x3]  ;;  %v1630_v14 = vshrl.u32 %v321_v13, 7  ;;  %vm1048_vm13 = vcmask 1045504  }
  0x28   : > { %v483_v11 = vld [vmem:[%s1902_s4] sm:$0xff]  ;;  %566 = vmatprep.mubr.f32.mxu0 %v1465_v12  ;;  %643 = vmatprep.mubr.f32.mxu1 %v1465_v12  ;;  %vm1054_vm14 = vcmask 7168   ;;  %p1215_p1 = scmp.ne.s32.totalorder %s1445_s24, 3 }
  0x29   : > { %v327_v15 = vsub.s32 1, %v1630_v14  ;;  %v335_v16 = vsub.s32 3, %v1630_v14  ;;  %v323_v17 = vsub.s32 0, %v1630_v14  ;;  %v331_v18 = vsub.s32 2, %v1630_v14  ;;  %v295_v19 = vld [vmem:[%s282_s27] sm:$0xff] }
  0x2a   : > { %v343_v20 = vsub.s32 5, %v1630_v14  ;;  %v351_v21 = vsub.s32 7, %v1630_v14  ;;  %v339_v22 = vsub.s32 4, %v1630_v14  ;;  %v347_v23 = vsub.s32 6, %v1630_v14 }
  0x2b   : > { %404 = vperm.xlu1 %1330, %v394_v4   ;;  %307 = vperm.xlu0 %1329, %v297_v5   ;;  %v328_v24 = vrot.slane %v295_v19, %v327_v15  ;;  %v336_v25 = vrot.slane %v295_v19, %v335_v16  ;;  %v324_v26 = vrot.slane %v295_v19, %v323_v17 }
  0x2c   : > { %v332_v27 = vrot.slane %v295_v19, %v331_v18  ;;  %v1645_v28 = vrot.slane %v295_v19, %v343_v20  ;;  %v1647_v29 = vrot.slane %v295_v19, %v351_v21  ;;  %v1649_v30 = vrot.slane %v295_v19, %v339_v22 }
  0x2d   : > { %v1651_v31 = vrot.slane %v295_v19, %v347_v23 }
  0x2f   : > { %317 = vperm.xlu1 %1330, %v299_v6   ;;  %312 = vperm.xlu0 %1329, %v298_v7  }
  0x33   : > { %414 = vperm.xlu1 %1330, %v396_v8   ;;  %409 = vperm.xlu0 %1329, %v395_v9  }
  0x37   : > { %492 = vperm.xlu1 %1330, %v484_v10   ;;  %487 = vperm.xlu0 %1329, %v483_v11  }
  0xa6   : > { %v400_v32 = vpop.permute.xlu1 %399  ;;  %v303_v33 = vpop.permute.xlu0 %302 }
  0xa7   : > { %v362_v34 = vmul.f32 %v328_v24, %v303_v33  ;;  %v364_v35 = vmul.f32 %v336_v25, %v303_v33  ;;  %v361_v36 = vmul.f32 %v324_v26, %v303_v33  ;;  %v363_v37 = vmul.f32 %v332_v27, %v303_v33 }
  0xa8   : > { %v366_v38 = vmul.f32 %v1645_v28, %v303_v33  ;;  %v368_v39 = vmul.f32 %v1647_v29, %v303_v33  ;;  %v365_v40 = vmul.f32 %v1649_v30, %v303_v33  ;;  %v367_v41 = vmul.f32 %v1651_v31, %v303_v33 }
  0xa9   : > { %v418_v42 = vadd.f32 %v400_v32, %v362_v34  ;;  %v420_v43 = vadd.f32 %v400_v32, %v364_v35  ;;  %v417_v44 = vadd.f32 %v400_v32, %v361_v36  ;;  %v419_v45 = vadd.f32 %v400_v32, %v363_v37 }
  0xaa   : > { %v1657_v46 = vpop.permute.xlu1 %404  ;;  %v1659_v47 = vpop.permute.xlu0 %307  ;;  %v1661_v48 = vadd.f32 %v400_v32, %v366_v38  ;;  %v1663_v49 = vadd.f32 %v400_v32, %v368_v39  ;;  %v1665_v50 = vadd.f32 %v400_v32, %v365_v40  ;;  %v1669_v54 = vadd.f32 %v400_v32, %v367_v41 }
  0xab   : > { %v370_v51 = vmul.f32 %v328_v24, %v1659_v47  ;;  %v450_v52 = vmax.f32 %v418_v42, 0.0  ;;  %v372_v53 = vmul.f32 %v336_v25, %v1659_v47  ;;  %v452_v55 = vmax.f32 %v420_v43, 0.0 }
  0xac   : > { %v369_v56 = vmul.f32 %v324_v26, %v1659_v47  ;;  %v449_v57 = vmax.f32 %v417_v44, 0.0  ;;  %v371_v58 = vmul.f32 %v332_v27, %v1659_v47  ;;  %v451_v61 = vmax.f32 %v419_v45, 0.0 }
  0xad   : > { %v426_v59 = vadd.f32 %v1657_v46, %v370_v51  ;;  %v428_v60 = vadd.f32 %v1657_v46, %v372_v53  ;;  %v374_v62 = vmul.f32 %v1645_v28, %v1659_v47  ;;  %v454_v3 = vmax.f32 %v1661_v48, 0.0 }
  0xae   : > { %v1677_v63 = vpop.permute.xlu1 %317  ;;  %v1679_v0 = vpop.permute.xlu0 %312  ;;  %v425_v1 = vadd.f32 %v1657_v46, %v369_v56  ;;  %v427_v2 = vadd.f32 %v1657_v46, %v371_v58  ;;  %v376_v4 = vmul.f32 %v1647_v29, %v1659_v47  ;;  %v375_v58 = vmul.f32 %v1651_v31, %v1659_v47 }
  0xaf   : > { %v458_v5 = vmax.f32 %v426_v59, 0.0  ;;  %v460_v6 = vmax.f32 %v428_v60, 0.0  ;;  %v378_v7 = vmul.f32 %v328_v24, %v1679_v0  ;;  %v386_v8 = vmul.f32 %v328_v24, %v1677_v63 }
  0xb0   : > { %v457_v9 = vmax.f32 %v425_v1, 0.0  ;;  %v459_v10 = vmax.f32 %v427_v2, 0.0  ;;  %v380_v11 = vmul.f32 %v336_v25, %v1679_v0  ;;  %v388_v13 = vmul.f32 %v336_v25, %v1677_v63 }
  0xb1   : > { %v1222_v15 = vpack.c.bf16 %v458_v5, %v450_v52  ;;  %v1230_v16 = vpack.c.bf16 %v460_v6, %v452_v55  ;;  %v377_v17 = vmul.f32 %v324_v26, %v1679_v0  ;;  %v385_v18 = vmul.f32 %v324_v26, %v1677_v63  ;;  %v481_v5 = vld [vmem:[%s1901_s3] sm:$0xff] }
  0xb2   : > { %v1692_v19 = vpop.permute.xlu1 %414  ;;  %v1694_v20 = vpop.permute.xlu0 %409  ;;  %v1224_v21 = vpack.c.bf16 %v457_v9, %v449_v57  ;;  %v1232_v22 = vpack.c.bf16 %v459_v10, %v451_v61  ;;  %v379_v23 = vmul.f32 %v332_v27, %v1679_v0  ;;  %v387_v24 = vmul.f32 %v332_v27, %v1677_v63 }
  0xb3   : > { %1223 = vmatprep.subr.bf16.mxu0 %v1222_v15  ;;  %1231 = vmatprep.subr.bf16.mxu1 %v1230_v16  ;;  %v434_v25 = vadd.f32 %v1694_v20, %v378_v7  ;;  %v442_v32 = vadd.f32 %v1692_v19, %v386_v8  ;;  %v436_v33 = vadd.f32 %v1694_v20, %v380_v11  ;;  %v456_v26 = vmax.f32 %v1663_v49, 0.0 }
  0xb4   : > { %1225 = vmatpush1.bf16.msra.mxu0 %v1224_v21  ;;  %1233 = vmatpush1.bf16.msra.mxu1 %v1232_v22  ;;  %v444_v34 = vadd.f32 %v1692_v19, %v388_v13  ;;  %v433_v35 = vadd.f32 %v1694_v20, %v377_v17  ;;  %v441_v36 = vadd.f32 %v1692_v19, %v385_v18  ;;  %v453_v27 = vmax.f32 %v1665_v50, 0.0  ;;  %v482_v17 = vld [vmem:[%s1901_s3 + $0x8] sm:$0x3] }
  0xb5   : > { %v466_v37 = vmax.f32 %v434_v25, 0.0  ;;  %v474_v38 = vmax.f32 %v442_v32, 0.0  ;;  %v468_v39 = vmax.f32 %v436_v33, 0.0  ;;  %v435_v40 = vadd.f32 %v1694_v20, %v379_v23 }
  0xb6   : > { %v476_v41 = vmax.f32 %v444_v34, 0.0  ;;  %v465_v42 = vmax.f32 %v433_v35, 0.0  ;;  %v473_v43 = vmax.f32 %v441_v36, 0.0  ;;  %v443_v44 = vadd.f32 %v1692_v19, %v387_v24 }
  0xb7   : > { %v1226_v45 = vpack.c.bf16 %v474_v38, %v466_v37  ;;  %v467_v48 = vmax.f32 %v435_v40, 0.0  ;;  %v430_v49 = vadd.f32 %v1657_v46, %v374_v62  ;;  %v432_v51 = vadd.f32 %v1657_v46, %v376_v4 }
  0xb8   : > { %v1234_v52 = vpack.c.bf16 %v476_v41, %v468_v39  ;;  %v1228_v53 = vpack.c.bf16 %v473_v43, %v465_v42  ;;  %v475_v55 = vmax.f32 %v443_v44, 0.0  ;;  %v373_v50 = vmul.f32 %v1649_v30, %v1659_v47  ;;  %v1768_v44 = vpop.permute.xlu1 %492 }
  0xb9   : > { %1227 = vmatprep.subr.bf16.mxu0 %v1226_v45  ;;  %v462_v56 = vmax.f32 %v430_v49, 0.0  ;;  %v464_v57 = vmax.f32 %v432_v51, 0.0  ;;  %v382_v59 = vmul.f32 %v1645_v28, %v1679_v0  ;;  %v455_v62 = vmax.f32 %v1669_v54, 0.0 }
  0xba   : > { %1235 = vmatprep.subr.bf16.mxu1 %v1234_v52  ;;  %1229 = vmatpush1.bf16.msra.mxu0 %v1228_v53  ;;  %v1236_v60 = vpack.c.bf16 %v475_v55, %v467_v48  ;;  %v429_v61 = vadd.f32 %v1657_v46, %v373_v50  ;;  %v390_v1 = vmul.f32 %v1645_v28, %v1677_v63 }
  0xbb   : > { %v1238_v2 = vpack.c.bf16 %v462_v56, %v454_v3  ;;  %v1246_v4 = vpack.c.bf16 %v464_v57, %v456_v26  ;;  %v431_v47 = vadd.f32 %v1657_v46, %v375_v58  ;;  %v438_v6 = vadd.f32 %v1694_v20, %v382_v59 }
  0xbc   : > { %1237 = vmatpush1.bf16.msra.mxu1 %v1236_v60  ;;  %v461_v7 = vmax.f32 %v429_v61, 0.0  ;;  %v446_v8 = vadd.f32 %v1692_v19, %v390_v1  ;;  %v384_v54 = vmul.f32 %v1647_v29, %v1679_v0  ;;  %v392_v28 = vmul.f32 %v1647_v29, %v1677_v63 }
  0xbd   : > { %1239 = vmatprep.subr.bf16.mxu0 %v1238_v2  ;;  %1247 = vmatprep.subr.bf16.mxu1 %v1246_v4  ;;  %v463_v3 = vmax.f32 %v431_v47, 0.0  ;;  %v470_v9 = vmax.f32 %v438_v6, 0.0  ;;  %v381_v10 = vmul.f32 %v1649_v30, %v1679_v0  ;;  %v389_v46 = vmul.f32 %v1649_v30, %v1677_v63 }
  0xbe   : > { %1207 = vmatmul.mubr.msk.f32.vlgmr.msra.gmra.mrb[0].mxu0 %vm495_vm1, %v481_v5  ;;  %v1240_v11 = vpack.c.bf16 %v461_v7, %v453_v27  ;;  %v478_v13 = vmax.f32 %v446_v8, 0.0  ;;  %v440_v15 = vadd.f32 %v1694_v20, %v384_v54  ;;  %v448_v16 = vadd.f32 %v1692_v19, %v392_v28 }
  0xbf   : > { %1209 = vmatmul.mubr.msk.f32.vlgmr.msra.gmra.mrb[0].mxu1 %vm495_vm1, %v481_v5  ;;  %v1248_v29 = vpack.c.bf16 %v463_v3, %v455_v62  ;;  %572 = vmatprep.mubr.f32.mxu0 %v1465_v12  ;;  %v437_v18 = vadd.f32 %v1694_v20, %v381_v10  ;;  %v445_v30 = vadd.f32 %v1692_v19, %v389_v46 }
  0xc0   : > { %1241 = vmatpush1.bf16.msra.mxu0 %v1240_v11  ;;  %v1242_v21 = vpack.c.bf16 %v478_v13, %v470_v9  ;;  %v472_v22 = vmax.f32 %v440_v15, 0.0  ;;  %v480_v23 = vmax.f32 %v448_v16, 0.0  ;;  %649 = vmatprep.mubr.f32.mxu1 %v1465_v12  ;;  %v383_v24 = vmul.f32 %v1651_v31, %v1679_v0 }
  0xc1   : > { %1249 = vmatpush1.bf16.msra.mxu1 %v1248_v29  ;;  %v469_v25 = vmax.f32 %v437_v18, 0.0  ;;  %v477_v32 = vmax.f32 %v445_v30, 0.0  ;;  %v391_v33 = vmul.f32 %v1651_v31, %v1677_v63  ;;  %v1761_v63 = vpop.permute.xlu0 %487 }
  0xc2   : > { %1243 = vmatprep.subr.bf16.mxu0 %v1242_v21  ;;  %v1250_v26 = vpack.c.bf16 %v480_v23, %v472_v22  ;;  %1208 = vmatmul.mubr.msk.f32.gmra.mrb[2].mxu0 %vm495_vm1, %v482_v17  ;;  %v439_v34 = vadd.f32 %v1694_v20, %v383_v24 }
  0xc3   : > { %1210 = vmatmul.mubr.msk.f32.gmra.mrb[2].mxu1 %vm495_vm1, %v482_v17  ;;  %v1244_v35 = vpack.c.bf16 %v477_v32, %v469_v25  ;;  %v447_v36 = vadd.f32 %v1692_v19, %v391_v33  ;;  %720 = vmatprep.mubr.f32.mxu0 %v1465_v12 }
  0xc4   : > { %1251 = vmatprep.subr.bf16.mxu1 %v1250_v26  ;;  %v471_v0 = vmax.f32 %v439_v34, 0.0  ;;  %797 = vmatprep.mubr.f32.mxu1 %v1465_v12 }
  0xc5   : > { %1245 = vmatpush1.bf16.msra.mxu0 %v1244_v35  ;;  %v479_v27 = vmax.f32 %v447_v36, 0.0 }
  0xc7   : > { %v1252_v31 = vpack.c.bf16 %v479_v27, %v471_v0 }
  0xc8   : > { %1211 = vmatmul.mubr.msk.f32.vlgmr.msra.gmra.mrb[4].mxu0 %vm495_vm1, %v481_v5 }
  0xc9   : > { %1253 = vmatpush1.bf16.msra.mxu1 %v1252_v31  ;;  %726 = vmatprep.mubr.f32.mxu0 %v1465_v12 }
  0xcc   : > { %1213 = vmatmul.mubr.msk.f32.vlgmr.msra.gmra.mrb[4].mxu1 %vm495_vm1, %v481_v5  ;;  %1212 = vmatmul.mubr.msk.f32.gmra.mrb[6].mxu0 %vm495_vm1, %v482_v17 }
  0xcd   : > { %803 = vmatprep.mubr.f32.mxu1 %v1465_v12 }
  0xd0   : > { %1214 = vmatmul.mubr.msk.f32.gmra.mrb[6].mxu1 %vm495_vm1, %v482_v17 }
 0x191   : > { %v568_v19 = vpop.f32.mrb[0].mxu0 }
 0x192   : > { %v569_v20 = vadd.f32 %v568_v19, %v1761_v63  ;;  %v645_v37 = vpop.f32.mrb[0].mxu1  ;;  %v570_v38 = vpop.f32.mrb[1].mxu0 }
 0x193   : > { %v646_v39 = vadd.f32 %v645_v37, %v1761_v63  ;;  %v571_v40 = vadd.f32 %v570_v38, %v1761_v63  ;;  %v647_v41 = vpop.f32.mrb[1].mxu1 }
 0x194   : > { %v818_v42 = vrot.slane %v569_v20, 7  ;;  %v1011_v43 = vsel %vm1010_vm2, %v569_v20, 0.0  ;;  %v648_v12 = vadd.f32 %v647_v41, %v1761_v63 }
 0x195   : > { %v820_v45 = vrot.slane %v646_v39, 7  ;;  %v819_v48 = vrot.slane %v571_v40, 7  ;;  %v1012_v49 = vsel %vm1010_vm2, %v571_v40, 0.0  ;;  %v574_v51 = vpop.f32.mrb[2].mxu0  ;;  %v1014_v58 = vsel %vm1010_vm2, %v646_v39, 0.0 }
 0x196   : > { %v1771_v52 = vsub.f32 %v569_v20, %v818_v42  ;;  %v1013_v53 = vadd.f32 %v1012_v49, %v1011_v43  ;;  %v821_v55 = vrot.slane %v648_v12, 7  ;;  %v651_v50 = vpop.f32.mrb[2].mxu1  ;;  %v576_v56 = vpop.f32.mrb[3].mxu0  ;;  %v575_v60 = vadd.f32 %v574_v51, %v1768_v44 }
 0x197   : > { %v1773_v57 = vsub.f32 %v646_v39, %v820_v45  ;;  %v1776_v59 = vsub.f32 %v571_v40, %v819_v48  ;;  %v653_v61 = vpop.f32.mrb[3].mxu1  ;;  %v1016_v47 = vsel %vm1010_vm2, %v648_v12, 0.0  ;;  %v652_v54 = vadd.f32 %v651_v50, %v1768_v44 }
 0x198   : > { %v842_v62 = vand.u32 2147483647, %v1771_v52  ;;  %v1780_v1 = vsub.f32 %v648_v12, %v821_v55  ;;  %v1015_v2 = vadd.f32 %v1014_v58, %v1013_v53  ;;  %v1029_v9 = vsel %vm1028_vm3, %v575_v60, 0.0 }
 0x199   : > { %v844_v4 = vand.u32 2147483647, %v1773_v57  ;;  %v843_v5 = vand.u32 2147483647, %v1776_v59  ;;  %v577_v13 = vadd.f32 %v576_v56, %v1768_v44  ;;  %v654_v15 = vadd.f32 %v653_v61, %v1768_v44 }
 0x19a   : > { %v850_v6 = vsub.f32 0.0, %v842_v62  ;;  %v845_v7 = vand.u32 2147483647, %v1780_v1  ;;  %v1017_v8 = vadd.f32 %v1016_v47, %v1015_v2  ;;  %v1032_v22 = vsel %vm1028_vm3, %v652_v54, 0.0 }
 0x19b   : > { %v852_v28 = vsub.f32 0.0, %v844_v4  ;;  %v851_v3 = vsub.f32 0.0, %v843_v5  ;;  %v722_v10 = vpop.f32.mrb[4].mxu0  ;;  %v1030_v23 = vsel %vm1028_vm3, %v577_v13, 0.0  ;;  %v1034_v19 = vsel %vm1028_vm3, %v654_v15, 0.0 }
 0x19c   : > { %v858_v46 = vmul.f32 1.442695, %v850_v6  ;;  %v853_v11 = vsub.f32 0.0, %v845_v7  ;;  %v724_v16 = vpop.f32.mrb[5].mxu0  ;;  %v723_v18 = vadd.f32 %v722_v10, %v1761_v63  ;;  %v1031_v24 = vadd.f32 %v1030_v23, %v1029_v9 }
 0x19d   : > { %v862_v29 = vmul.f32 1.442695, %v852_v28  ;;  %v860_v17 = vmul.f32 1.442695, %v851_v3  ;;  %v725_v30 = vadd.f32 %v724_v16, %v1761_v63  ;;  %vm898_vm4 = vcmp.ge.f32.partialorder %v1771_v52, 0.0 }
 0x19e   : > { %1331 = vpow2.f32 %v858_v46  ;;  %v864_v21 = vmul.f32 1.442695, %v853_v11  ;;  %v822_v25 = vrot.slane %v723_v18, 7  ;;  %v1018_v32 = vsel %vm1010_vm2, %v723_v18, 0.0 }
 0x19f   : > { %1333 = vpow2.f32 %v862_v29  ;;  %v799_v33 = vpop.f32.mrb[4].mxu1  ;;  %v728_v26 = vpop.f32.mrb[6].mxu0  ;;  %v1019_v34 = vadd.f32 %v1018_v32, %v1017_v8  ;;  %v823_v36 = vrot.slane %v725_v30, 7  ;;  %v1033_v31 = vadd.f32 %v1032_v22, %v1031_v24 }
 0x1a0   : > { %1335 = vpow2.f32 %v860_v17  ;;  %v800_v35 = vadd.f32 %v799_v33, %v1761_v63  ;;  %v801_v0 = vpop.f32.mrb[5].mxu1  ;;  %v730_v27 = vpop.f32.mrb[7].mxu0  ;;  %v1797_v20 = vsub.f32 %v723_v18, %v822_v25  ;;  %v729_v40 = vadd.f32 %v728_v26, %v1768_v44 }
 0x1a1   : > { %1337 = vpow2.f32 %v864_v21  ;;  %v1799_v38 = vsub.f32 %v725_v30, %v823_v36  ;;  %v802_v39 = vadd.f32 %v801_v0, %v1761_v63  ;;  %v1035_v41 = vadd.f32 %v1034_v19, %v1033_v31 }
 0x1a2   : > { %v824_v37 = vrot.slane %v800_v35, 7  ;;  %v846_v42 = vand.u32 2147483647, %v1797_v20  ;;  %v731_v12 = vadd.f32 %v730_v27, %v1768_v44  ;;  %v1020_v55 = vsel %vm1010_vm2, %v725_v30, 0.0 }
 0x1a3   : > { %v805_v43 = vpop.f32.mrb[6].mxu1  ;;  %v847_v48 = vand.u32 2147483647, %v1799_v38  ;;  %v825_v49 = vrot.slane %v802_v39, 7  ;;  %v1036_v50 = vsel %vm1028_vm3, %v729_v40, 0.0  ;;  %v1021_v3 = vadd.f32 %v1020_v55, %v1019_v34 }
 0x1a4   : > { %v1805_v45 = vsub.f32 %v800_v35, %v824_v37  ;;  %v807_v51 = vpop.f32.mrb[7].mxu1  ;;  %v854_v53 = vsub.f32 0.0, %v846_v42  ;;  %v806_v63 = vadd.f32 %v805_v43, %v1768_v44  ;;  %v1038_v61 = vsel %vm1028_vm3, %v731_v12, 0.0 }
 0x1a5   : > { %v855_v58 = vsub.f32 0.0, %v847_v48  ;;  %v1812_v60 = vsub.f32 %v802_v39, %v825_v49  ;;  %v1037_v2 = vadd.f32 %v1036_v50, %v1035_v41  ;;  %v808_v11 = vadd.f32 %v807_v51, %v1768_v44 }
 0x1a6   : > { %v848_v56 = vand.u32 2147483647, %v1805_v45  ;;  %v866_v62 = vmul.f32 1.442695, %v854_v53  ;;  %v1040_v7 = vsel %vm1028_vm3, %v806_v63, 0.0  ;;  %v1022_v29 = vsel %vm1010_vm2, %v800_v35, 0.0 }
 0x1a7   : > { %v868_v47 = vmul.f32 1.442695, %v855_v58  ;;  %v849_v6 = vand.u32 2147483647, %v1812_v60  ;;  %v1039_v28 = vadd.f32 %v1038_v61, %v1037_v2  ;;  %v1023_v30 = vadd.f32 %v1022_v29, %v1021_v3 }
 0x1a8   : > { %v1332_v4 = vpop.eup %1331  ;;  %v856_v5 = vsub.f32 0.0, %v848_v56  ;;  %1339 = vpow2.f32 %v866_v62  ;;  %v1024_v21 = vsel %vm1010_vm2, %v802_v39, 0.0  ;;  %v1042_v24 = vsel %vm1028_vm3, %v808_v11, 0.0 }
 0x1a9   : > { %v1334_v8 = vpop.eup %1333  ;;  %v874_v54 = vadd.f32 1.0, %v1332_v4  ;;  %1341 = vpow2.f32 %v868_v47  ;;  %v857_v46 = vsub.f32 0.0, %v849_v6  ;;  %v1041_v22 = vadd.f32 %v1040_v7, %v1039_v28 }
 0x1aa   : > { %v1336_v9 = vpop.eup %1335  ;;  %v876_v10 = vadd.f32 1.0, %v1334_v8  ;;  %v870_v16 = vmul.f32 1.442695, %v856_v5  ;;  %v1025_v23 = vadd.f32 %v1024_v21, %v1023_v30  ;;  %v1466_v33 = vmov 1983009808  }
 0x1ab   : > { %v1338_v13 = vpop.eup %1337  ;;  %1343 = vrcp.f32 %v874_v54  ;;  %v875_v15 = vadd.f32 1.0, %v1336_v9  ;;  %v872_v18 = vmul.f32 1.442695, %v857_v46  ;;  %v1043_v44 = vadd.f32 %v1042_v24, %v1041_v22 }
 0x1ac   : > { %1345 = vrcp.f32 %v876_v10  ;;  %v877_v17 = vadd.f32 1.0, %v1338_v13  ;;  %1026 = vadd.xlane.f32.xlu0 %v1025_v23  ;;  %v974_v26 = vunpack.c.l.s4 %v1466_v33  ;;  %vm900_vm6 = vcmp.ge.f32.partialorder %v1773_v57, 0.0 }
 0x1ad   : > { %1347 = vrcp.f32 %v875_v15  ;;  %1044 = vadd.xlane.f32.xlu1 %v1043_v44  ;;  %vm899_vm7 = vcmp.ge.f32.partialorder %v1776_v59, 0.0  ;;  %vm901_vm8 = vcmp.ge.f32.partialorder %v1780_v1, 0.0  ;;  %vm902_vm9 = vcmp.ge.f32.partialorder %v1797_v20, 0.0 }
 0x1ae   : > { %1349 = vrcp.f32 %v877_v17  ;;  %v975_v41 = vunpack.c.0.s8 %v974_v26  ;;  %vm903_vm10 = vcmp.ge.f32.partialorder %v1799_v38, 0.0  ;;  %vm904_vm11 = vcmp.ge.f32.partialorder %v1805_v45, 0.0 }
 0x1af   : > { %1351 = vpow2.f32 %v870_v16  ;;  %vm905_vm12 = vcmp.ge.f32.partialorder %v1812_v60, 0.0  ;;  %v1009_v60 = vld [vmem:[#allocation2] sm:$0xff] }
 0x1b0   : > { %1353 = vpow2.f32 %v872_v18  ;;  %v978_v2 = vsub.s32 %v975_v41, %v1630_v14 }
 0x1b2   : > { %v1340_v25 = vpop.eup %1339 }
 0x1b3   : > { %v1342_v32 = vpop.eup %1341  ;;  %v878_v34 = vadd.f32 1.0, %v1340_v25 }
 0x1b4   : > { %v879_v36 = vadd.f32 1.0, %v1342_v32 }
 0x1b5   : > { %v1344_v35 = vpop.eup %1343  ;;  %1355 = vrcp.f32 %v878_v34 }
 0x1b6   : > { %v1346_v0 = vpop.eup %1345  ;;  %v906_v27 = vsub.f32 1.0, %v1344_v35  ;;  %1357 = vrcp.f32 %v879_v36 }
 0x1b7   : > { %v1348_v31 = vpop.eup %1347  ;;  %v908_v19 = vsub.f32 1.0, %v1346_v0 }
 0x1b8   : > { %v1350_v37 = vpop.eup %1349  ;;  %v914_v39 = vsel %vm898_vm4, %v1344_v35, %v906_v27  ;;  %v907_v40 = vsub.f32 1.0, %v1348_v31 }
 0x1b9   : > { %v1352_v42 = vpop.eup %1351  ;;  %v922_v43 = vsub.f32 1.0, %v914_v39  ;;  %v916_v12 = vsel %vm900_vm6, %v1346_v0, %v908_v19  ;;  %v909_v48 = vsub.f32 1.0, %v1350_v37 }
 0x1ba   : > { %v1354_v49 = vpop.eup %1353  ;;  %v924_v51 = vsub.f32 1.0, %v916_v12  ;;  %v915_v53 = vsel %vm899_vm7, %v1348_v31, %v907_v40  ;;  %v880_v52 = vadd.f32 1.0, %v1352_v42 }
 0x1bb   : > { %v938_v55 = vrot.slane %v922_v43, 1  ;;  %v923_v50 = vsub.f32 1.0, %v915_v53  ;;  %v917_v63 = vsel %vm901_vm8, %v1350_v37, %v909_v48  ;;  %v881_v56 = vadd.f32 1.0, %v1354_v49 }
 0x1bc   : > { %v940_v58 = vrot.slane %v924_v51, 1  ;;  %v925_v57 = vsub.f32 1.0, %v917_v63  ;;  %1359 = vrcp.f32 %v880_v52 }
 0x1bd   : > { %v955_v61 = vsel %vm954_vm5, %v938_v55, %v914_v39  ;;  %v939_v62 = vrot.slane %v923_v50, 1  ;;  %1361 = vrcp.f32 %v881_v56 }
 0x1be   : > { %v957_v59 = vsel %vm954_vm5, %v940_v58, %v916_v12  ;;  %v941_v4 = vrot.slane %v925_v57, 1 }
 0x1bf   : > { %v956_v5 = vsel %vm954_vm5, %v939_v62, %v915_v53  ;;  %v1356_v1 = vpop.eup %1355 }
 0x1c0   : > { %v971_v47 = vcombine.low %v955_v61, %v956_v5  ;;  %v958_v6 = vsel %vm954_vm5, %v941_v4, %v917_v63  ;;  %v1358_v7 = vpop.eup %1357  ;;  %v910_v54 = vsub.f32 1.0, %v1356_v1 }
 0x1c1   : > { %v972_v8 = vcombine.low %v957_v59, %v958_v6  ;;  %v911_v3 = vsub.f32 1.0, %v1358_v7 }
 0x1c2   : > { %v979_v28 = vrot.slane %v971_v47, %v978_v2  ;;  %v918_v10 = vsel %vm902_vm9, %v1356_v1, %v910_v54 }
 0x1c3   : > { %v986_v9 = vrot.slane %v972_v8, %v978_v2  ;;  %v926_v14 = vsub.f32 1.0, %v918_v10  ;;  %v919_v46 = vsel %vm903_vm10, %v1358_v7, %v911_v3 }
 0x1c4   : > { %v927_v13 = vsub.f32 1.0, %v919_v46 }
 0x1c5   : > { %v987_v11 = vcombine.low %v979_v28, %v986_v9  ;;  %v942_v16 = vrot.slane %v926_v14, 1 }
 0x1c6   : > { %v1360_v15 = vpop.eup %1359  ;;  %v943_v18 = vrot.slane %v927_v13, 1 }
 0x1c7   : > { %v1362_v29 = vpop.eup %1361  ;;  %1007 = vst [vmem:[%s1595_s26] sm:$0xff] %v987_v11  ;;  %v912_v17 = vsub.f32 1.0, %v1360_v15  ;;  %v959_v30 = vsel %vm954_vm5, %v942_v16, %v918_v10 }
 0x1c8   : > { %v913_v20 = vsub.f32 1.0, %v1362_v29  ;;  %v960_v22 = vsel %vm954_vm5, %v943_v18, %v919_v46 }
 0x1c9   : > { %v920_v21 = vsel %vm904_vm11, %v1360_v15, %v912_v17  ;;  %v988_v23 = vcombine.low %v959_v30, %v960_v22 }
 0x1ca   : > { %v928_v38 = vsub.f32 1.0, %v920_v21  ;;  %v921_v24 = vsel %vm905_vm12, %v1362_v29, %v913_v20 }
 0x1cb   : > { %v929_v44 = vsub.f32 1.0, %v921_v24  ;;  %v996_v34 = vrot.slane %v988_v23, %v978_v2 }
 0x1cc   : > { %v944_v25 = vrot.slane %v928_v38, 1 }
 0x1cd   : > { %v945_v32 = vrot.slane %v929_v44, 1 }
 0x1ce   : > { %v961_v33 = vsel %vm954_vm5, %v944_v25, %v920_v21 }
 0x1cf   : > { %v962_v26 = vsel %vm954_vm5, %v945_v32, %v921_v24 }
 0x1d0   : > { %v989_v35 = vcombine.low %v961_v33, %v962_v26 }
 0x1d2   : > { %v1003_v45 = vrot.slane %v989_v35, %v978_v2 }
 0x1d4   : > { %v1004_v36 = vcombine.low %v996_v34, %v1003_v45 }
 0x1d6   : > { %1008 = vst [vmem:[%s1595_s26 + $0x8] sm:$0xff] %v1004_v36 }
 0x239   : > { %v1027_v0 = vpop.xlane.xlu0 %1026 }
 0x23a   : > { %v1045_v27 = vpop.xlane.xlu1 %1044  ;;  %v1049_v31 = vrot.slane %v1027_v0, 2  ;;  %1059 = sbr.rel (%p1215_p1) target bundleno = 620 (0x26c), region = 48 }
 0x23b   : > { %v1050_v19 = vrot.slane %v1045_v27, 2 }
 0x23d   : > { %v1051_v37 = vsel %vm1048_vm13, %v1049_v31, %v1050_v19 }
 0x23e   : > { %v1053_v39 = vadd.f32 %v1051_v37, %v1009_v60 }
 0x240   : > { %1055 = vst.msk [vmem:[#allocation2] sm:$0xff] %vm1054_vm14, %v1053_v39 }
 0x247   : > { %v1060_v40 = vld [vmem:[#allocation2] sm:$0xff] }
 0x248   : > { %v1061_v41 = vmul.f32 0.00024414063, %v1060_v40 }
 0x24a   : > { %v1062_v42 = vand.u32 2147483647, %v1061_v41  ;;  %vm1069_vm15 = vcmp.ge.f32.partialorder %v1061_v41, 0.0 }
 0x24c   : > { %v1063_v43 = vsub.f32 0.0, %v1062_v42 }
 0x24e   : > { %v1064_v12 = vmul.f32 1.442695, %v1063_v43 }
 0x250   : > { %1363 = vpow2.f32 %v1064_v12 }
 0x25a   : > { %v1364_v48 = vpop.eup %1363 }
 0x25b   : > { %v1066_v49 = vadd.f32 1.0, %v1364_v48 }
 0x25d   : > { %1365 = vrcp.f32 %v1066_v49 }
 0x267   : > { %v1366_v51 = vpop.eup %1365 }
 0x268   : > { %v1070_v53 = vsub.f32 1.0, %v1366_v51 }
 0x26a   : > { %v1071_v52 = vsel %vm1069_vm15, %v1366_v51, %v1070_v53 }
 0x26b   : > { %1072 = vst.msk [vmem:[%s1589_s14] sm:$0xff] %vm1054_vm14, %v1071_v52 }
 0x26c PF: > { %s1218_s24 = sshll.u32 %s1449_s25, 5  ;;  %s1094_s8 = sshll.u32 %s1595_s26, 4  ;;  %s1847_s8 = int_to_ptr.vmem [resolvable:$true] %s1094_s8 }
 0x26d   : > { %s1090_s7 = sadd.s32 %s1218_s24, %s1576_s17  ;;  %s1916_s14 = sand.u32 1, %s1437_s22  }
 0x26e   : > { %s1219_s18 = sshll.u32 %s1090_s7, 5  ;;  %s1074_s16 = scalar_lea.sflag [#allocation4], %s1916_s14 }
 0x26f   : > { %s1092_s19 = scalar_lea.hbm %s1903_s5, %s1219_s18  ;;  %s1367_s20 = scalar_lea.vmem %s1847_s8, 256 }
 0x270   : > { %p1368_p2 = scmp.ne.s32.totalorder %s1847_s8, %s1367_s20  ;;  %s1467_s25 = smov [#allocation3]  }
 0x271   : > { %s1371_s17 = sshll.u32 %s1467_s25, 4  ;;  %s1372_s17 = int_to_ptr.vmem [resolvable:$false] %s1371_s17 }
 0x272   : > { %p1369_p4 = pnand %p1368_p2, %p1554_p3  ;;  %s1373_s26 = scalar_lea.vmem %s1372_s17, 512 }
 0x273   : > { %p1374_p6 = scmp.lt.s32.totalorder %s1847_s8, %s1372_s17  ;;  %p1375_p7 = scmp.lt.s32.totalorder %s1373_s26, %s1367_s20 }
 0x274   : > { %p1370_p5 = pneg %p1369_p4 }
 0x275   : > { %p1376_p9 = por %p1375_p7, %p1374_p6 }
 0x277   : > { %p1377_p10 = pnand %p1376_p9, %p1370_p5 }
 0x279   : > { %1380 = shalt.err (!%p1377_p10)
}
 0x27a   : > { %s1381_s27 = scalar_lea.hbm %s1092_s19, 256  ;;  %s1385_s30 = scalar_lea.hbm %s1903_s5, 2048 }
 0x27b   : > { %p1382_p11 = scmp.ne.s32.totalorder %s1092_s19, %s1381_s27  ;;  %p1386_p0 = scmp.lt.u32.totalorder %s1092_s19, %s1903_s5 }
 0x27c   : > { %p1387_p1 = scmp.lt.u32.totalorder %s1385_s30, %s1381_s27  ;;  %p1389_p4 = scmp.lt.u32.totalorder %s1381_s27, %s1092_s19 }
 0x27d   : > { %p1383_p12 = pnand %p1382_p11, %p1554_p3 }
 0x27e   : > { %p1388_p2 = por %p1387_p1, %p1386_p0 }
 0x27f   : > { %p1384_p13 = pneg %p1383_p12 }
 0x280   : > { %p1390_p6 = por %p1389_p4, %p1388_p2 }
 0x282   : > { %p1391_p5 = pnand %p1390_p6, %p1384_p13 }
 0x284   : > { %1394 = shalt.err (!%p1391_p5)
}
 0x285   : > { %1254 = dma.vmem_to_hbm [thread:$0]  (%p1554_p3), %s1847_s8, 256, %s1092_s19, %s1074_s16  }
 0x286 PF: > { %p1260_p7 = scmp.ge.s32.totalorder %s1461_s28, 2  ;;  %s1109_s18 = sand.u32 1, %s1433_s21  }
 0x287   : > { %s1110_s12 = scalar_lea.sflag [#allocation4], %s1109_s18 }
 0x288   : > { %p1257_p9 = pnand %p1260_p7, %p1563_p8 }
 0x28a   : > { %1428 = dma.done.wait (!%p1257_p9), %s1110_s12, 256  }
 0x28b   : > { %1430 = vsyncadd (!%p1257_p9), %s1110_s12, 4294967040  ;;  %s20_s28 = sadd.s32 1, %s1461_s28   ;;  %s1917_s24 = sld [smem:[#allocation6_spill]] }
 0x28c   : > { %p17_p10 = scmp.ge.s32.totalorder %s20_s28, 10   ;;  %s1918_s25 = sld [smem:[#allocation7_spill]] }
 0x28d   : > { %s1919_s26 = sld [smem:[#allocation8_spill]]  ;;  %s1920_s27 = sld [smem:[#allocation9_spill]] }
 0x28e   : > { %s1921_s21 = smov %s1437_s22  ;;  %s1922_s22 = smov %s1441_s23 }
 0x28f   : > { %s1923_s23 = smov %s1572_s15  ;;  %19 = sbr.rel (!%p17_p10) target bundleno = 5 (0x5), region = 95 }
 0x296   :  { %1122 = vsyncpa [#allocation4], 1 }
 0x297   :  { %1124 = vsyncpa [#allocation4 + $0x1], 1 }

</bundles_post_ra>
